<compile_context>
chip_gen: v7x
topology: tpu7x:2x2x1
jax: 0.10.0
libtpu: 0.0.40
codegen_flags: <defaults>
</compile_context>

<pallas_src>
import functools

import jax
import jax.numpy as jnp
from jax.experimental import pallas as pl
from jax.experimental.pallas import tpu as pltpu


def _round_up(n, m):
    return ((n + m - 1) // m) * m


# --------------------------------------------------------------------------- #
# Kernel
# --------------------------------------------------------------------------- #
def _gru_head_kernel(x_ref, w_ref, b_ref, out_ref, *, D, H, O, w_offs, b_offs):
    """One batch block (batch on lanes): 2 GRU cells (seq_len==1, h0==0) + Linear head.

    x_ref:   (D, b_blk)          input block, batch on lanes
    w_ref:   (Rw, Cw)            weight slab, PyTorch-native (out,in) sub-blocks stacked on rows
    b_ref:   (Rb, 1)             bias slab (column vector, broadcast along lanes), always f32
    out_ref: (O, b_blk)          lane-dense logits row
    """
    x = x_ref[...]
    b = b_ref[...].astype(jnp.float32)          # (Rb, 1), broadcasts along lane/batch axis

    def sigmoid(v):
        # Exact identity; guarantees a single EUP op (tanh), mul/add land on the VALU.
        return 0.5 * (1.0 + jnp.tanh(0.5 * v))

    def cell(inp, w_row, in_dim, rz_off, bin_off, bhn_off):
        # h_prev == 0  =>  gh == b_hh  and  z * h_prev == 0.
        w = w_ref[w_row:w_row + 3 * H, 0:in_dim]                      # (3H, in_dim)
        gi = jnp.dot(w, inp.astype(w.dtype),
                     preferred_element_type=jnp.float32)              # (3H, b_blk) f32 acc
        rz = sigmoid(gi[0:2 * H, :] + b[rz_off:rz_off + 2 * H, :])
        r = rz[0:H, :]
        z = rz[H:2 * H, :]
        n = jnp.tanh(gi[2 * H:3 * H, :]
                     + b[bin_off:bin_off + H, :]
                     + r * b[bhn_off:bhn_off + H, :])
        return (1.0 - z) * n                                          # + z * h_prev == 0

    w0, w1, wfc = w_offs
    rz0, bin0, bhn0, rz1, bin1, bhn1, bfc = b_offs

    h0 = cell(x, w0, D, rz0, bin0, bhn0)        # (H, b_blk)   GRU layer 0
    h1 = cell(h0, w1, H, rz1, bin1, bhn1)       # (H, b_blk)   GRU layer 1 == lstm_out[:, -1, :]^T

    fcw = w_ref[wfc:wfc + O, 0:H]                                     # (O, H)
    logits = jnp.dot(fcw, h1.astype(fcw.dtype),
                     preferred_element_type=jnp.float32) + b[bfc:bfc + O, :]
    out_ref[...] = logits.astype(out_ref.dtype)                       # lane-dense (O, b_blk)


# --------------------------------------------------------------------------- #
# Wrapper
# --------------------------------------------------------------------------- #
def _pick_batch_block(B, batch_block):
    """Lane-axis batch tile: full B for small inputs, else a multiple of 128 chosen so
    the 'parallel' grid has >= 2 steps (keeps both v7x TensorCores busy)."""
    if B <= 128:
        return B
    tgt = _round_up(pl.cdiv(B, 2), 128)
    return max(128, min(batch_block, tgt))


def bug_classifier_forward(x, packed, *, compute_dtype=jnp.float32, batch_block=1024):
    """x: (B, input_dim) float32. Returns (B, output_dim) raw logits (no sigmoid).

    Note: this path is only valid for the module's forward() as written
    (seq_len == 1, zero initial hidden state) -- which is guaranteed by the
    (B, input_dim) signature itself. Inter-layer dropout is inactive here.
    """
    B, D = x.shape
    H = packed["hidden_dim"]
    O = packed["output_dim"]
    assert D == packed["input_dim"]

    # bf16 operands (f32 accumulate) recommended on v6e/v7x; biases stay f32 always
    # so all gate math (sigmoid/tanh/adds) runs in f32 (v5e has no bf16 VPU/EUP).
    w_slab = packed["w_slab"].astype(compute_dtype)
    b_slab = packed["b_slab"]
    x_t = x.T.astype(compute_dtype)                 # (D, B): batch on the lane axis

    b_blk = _pick_batch_block(B, batch_block)
    grid = (pl.cdiv(B, b_blk),)

    Rw, Cw = w_slab.shape
    Rb = b_slab.shape[0]

    flops = 2 * B * (3 * H * (D + H) + H * O) + 12 * B * H
    transcendentals = 6 * B * H
    bytes_accessed = int(x_t.size * x_t.dtype.itemsize
                         + B * O * 4
                         + w_slab.size * w_slab.dtype.itemsize
                         + b_slab.size * 4)

    kernel = functools.partial(_gru_head_kernel, D=D, H=H, O=O,
                               w_offs=packed["w_offs"], b_offs=packed["b_offs"])

    out_t = pl.pallas_call(
        kernel,
        out_shape=jax.ShapeDtypeStruct((O, B), jnp.float32),
        grid=grid,
        in_specs=[
            pl.BlockSpec((D, b_blk), lambda i: (0, i)),   # x^T streamed over batch lanes
            pl.BlockSpec((Rw, Cw), lambda i: (0, 0)),     # weight slab: resident
            pl.BlockSpec((Rb, 1), lambda i: (0, 0)),      # bias slab: resident
        ],
        out_specs=pl.BlockSpec((O, b_blk), lambda i: (0, i)),   # lane-dense output row
        compiler_params=pltpu.CompilerParams(
            dimension_semantics=("parallel",)),
        cost_estimate=pl.CostEstimate(flops=flops,
                                      transcendentals=transcendentals,
                                      bytes_accessed=bytes_accessed),
    )(x_t, w_slab, b_slab)

    return out_t.T                                   # (B, O) raw logits


# --------------------------------------------------------------------------- #
# Parameter construction (PyTorch-style raw params -> packed slabs)
# --------------------------------------------------------------------------- #
def init_raw_params(key, input_dim, hidden_dim, output_dim=1):
    """Deterministic PyTorch-style U(-1/sqrt(H), 1/sqrt(H)) init, native shapes:
    w_ih_l* (3H, in), w_hh_l* (3H, H), biases (3H,), fc_w (O, H), fc_b (O,).
    w_hh_* are only used by the pure-JAX reference to prove the h0 == 0
    simplification is exact; they are never shipped to the kernel."""
    ks = jax.random.split(key, 10)
    bound = 1.0 / jnp.sqrt(jnp.float32(hidden_dim))

    def u(k, shape):
        return jax.random.uniform(k, shape, jnp.float32, -bound, bound)

    D, H, O = input_dim, hidden_dim, output_dim
    return {
        "w_ih_l0": u(ks[0], (3 * H, D)),
        "w_hh_l0": u(ks[1], (3 * H, H)),
        "b_ih_l0": u(ks[2], (3 * H,)),
        "b_hh_l0": u(ks[3], (3 * H,)),
        "w_ih_l1": u(ks[4], (3 * H, H)),
        "w_hh_l1": u(ks[5], (3 * H, H)),
        "b_ih_l1": u(ks[6], (3 * H,)),
        "b_hh_l1": u(ks[7], (3 * H,)),
        "fc_w":    u(ks[8], (O, H)),
        "fc_b":    u(ks[9], (O,)),
    }


def pack_params(raw, input_dim, hidden_dim, output_dim=1):
    """Fold biases (exact under h0==0) and pack kernel-side params into two slabs:
    a row-stacked weight slab (sublane-aligned sub-blocks, lane-padded columns) and
    a column bias slab that broadcasts along the lane/batch axis in-kernel."""
    D, H, O = input_dim, hidden_dim, output_dim

    # ---- weight slab (PyTorch-native (out,in) orientation, stacked along rows) ----
    w0 = 0
    w1 = _round_up(w0 + 3 * H, 8)
    wfc = _round_up(w1 + 3 * H, 8)
    n_rows = _round_up(wfc + O, 8)
    n_cols = _round_up(max(D, H), 128)

    w_slab = jnp.zeros((n_rows, n_cols), jnp.float32)
    w_slab = w_slab.at[w0:w0 + 3 * H, 0:D].set(raw["w_ih_l0"])
    w_slab = w_slab.at[w1:w1 + 3 * H, 0:H].set(raw["w_ih_l1"])
    w_slab = w_slab.at[wfc:wfc + O, 0:H].set(raw["fc_w"])

    # ---- bias slab (column vector; every segment start sublane(8)-aligned) ----
    rz0 = 0
    bin0 = _round_up(rz0 + 2 * H, 8)
    bhn0 = _round_up(bin0 + H, 8)
    rz1 = _round_up(bhn0 + H, 8)
    bin1 = _round_up(rz1 + 2 * H, 8)
    bhn1 = _round_up(bin1 + H, 8)
    bfc = _round_up(bhn1 + H, 8)
    b_rows = _round_up(bfc + O, 8)

    b_slab = jnp.zeros((b_rows, 1), jnp.float32)
    # r/z gates see gi + gh with gh == b_hh (h0 == 0) -> fold the two biases.
    b_slab = b_slab.at[rz0:rz0 + 2 * H, 0].set((raw["b_ih_l0"] + raw["b_hh_l0"])[:2 * H])
    b_slab = b_slab.at[bin0:bin0 + H, 0].set(raw["b_ih_l0"][2 * H:])
    b_slab = b_slab.at[bhn0:bhn0 + H, 0].set(raw["b_hh_l0"][2 * H:])
    b_slab = b_slab.at[rz1:rz1 + 2 * H, 0].set((raw["b_ih_l1"] + raw["b_hh_l1"])[:2 * H])
    b_slab = b_slab.at[bin1:bin1 + H, 0].set(raw["b_ih_l1"][2 * H:])
    b_slab = b_slab.at[bhn1:bhn1 + H, 0].set(raw["b_hh_l1"][2 * H:])
    b_slab = b_slab.at[bfc:bfc + O, 0].set(raw["fc_b"])

    return {"w_slab": w_slab, "b_slab": b_slab,
            "w_offs": (w0, w1, wfc),
            "b_offs": (rz0, bin0, bhn0, rz1, bin1, bhn1, bfc),
            "input_dim": D, "hidden_dim": H, "output_dim": O}


# --------------------------------------------------------------------------- #
# Pure-JAX reference of the PyTorch forward (full GRU math, h0 = 0)
# --------------------------------------------------------------------------- #
def reference_forward(x, p):
    H = p["w_hh_l0"].shape[1]

    def cell(inp, h, wih, whh, bih, bhh):
        gi = inp @ wih.T + bih
        gh = h @ whh.T + bhh
        r = jax.nn.sigmoid(gi[:, :H] + gh[:, :H])
        z = jax.nn.sigmoid(gi[:, H:2 * H] + gh[:, H:2 * H])
        n = jnp.tanh(gi[:, 2 * H:] + r * gh[:, 2 * H:])
        return (1.0 - z) * n + z * h

    h0 = jnp.zeros((x.shape[0], H), jnp.float32)
    h1 = cell(x, h0, p["w_ih_l0"], p["w_hh_l0"], p["b_ih_l0"], p["b_hh_l0"])
    h2 = cell(h1, h0, p["w_ih_l1"], p["w_hh_l1"], p["b_ih_l1"], p["b_hh_l1"])
    return h2 @ p["fc_w"].T + p["fc_b"]


if __name__ == "__main__":
    key = jax.random.PRNGKey(0)
    k_x, k_p, k_x2 = jax.random.split(key, 3)

    B, INPUT_DIM, HIDDEN_DIM, OUTPUT_DIM = 2, 16, 32, 1
    x = jax.random.normal(k_x, (B, INPUT_DIM), dtype=jnp.float32)

    raw = init_raw_params(k_p, INPUT_DIM, HIDDEN_DIM, OUTPUT_DIM)
    packed = pack_params(raw, INPUT_DIM, HIDDEN_DIM, OUTPUT_DIM)

    # Small-batch path (single block, full-dim lane tile), f32.
    out = jax.block_until_ready(bug_classifier_forward(x, packed))
    ref = reference_forward(x, raw)
    assert out.shape == (B, OUTPUT_DIM)
    assert jnp.allclose(out, ref, atol=1e-5, rtol=1e-5)

    # Multi-block path: grid of 2 "parallel" steps (v7x dual-TC split), lane-tiled batch.
    B2 = 512
    x2 = jax.random.normal(k_x2, (B2, INPUT_DIM), dtype=jnp.float32)
    out2 = jax.block_until_ready(bug_classifier_forward(x2, packed))
    ref2 = reference_forward(x2, raw)
    assert jnp.allclose(out2, ref2, atol=1e-4, rtol=1e-4)

    # bf16-operand / f32-accumulate path (recommended default on v6e/v7x); looser tolerance.
    out_bf16 = jax.block_until_ready(
        bug_classifier_forward(x2, packed, compute_dtype=jnp.bfloat16))
    assert jnp.allclose(out_bf16, ref2, atol=1e-1, rtol=1e-1)

    print("KERNEL_OK")
</pallas_src>

<mosaic_0001>
module attributes {stable_mosaic.version = 11 : i64} {
  func.func @_gru_head_kernel(%arg0: i32, %arg1: memref<16x2xf32, #tpu.memory_space<vmem>>, %arg2: memref<200x128xf32, #tpu.memory_space<vmem>>, %arg3: memref<264x1xf32, #tpu.memory_space<vmem>>, %arg4: memref<1x2xf32, #tpu.memory_space<vmem>>) attributes {dimension_semantics = [#tpu.dimension_semantics<parallel>], iteration_bounds = array<i64: 1>, scalar_prefetch = 0 : i64, scratch_operands = 0 : i64, tpu.core_type = #tpu.core_type<tc>, window_params = [{transform_indices = @transform_0, window_bounds = array<i64: 16, 2>}, {pipeline_mode = #tpu.pipeline_mode<synchronous>, transform_indices = @transform_1, window_bounds = array<i64: 200, 128>}, {pipeline_mode = #tpu.pipeline_mode<synchronous>, transform_indices = @transform_2, window_bounds = array<i64: 264, 1>}, {transform_indices = @transform_3, window_bounds = array<i64: 1, 2>}]} {
    %c0 = arith.constant 0 : index
    %c0_0 = arith.constant 0 : index
    %0 = vector.load %arg1[%c0, %c0_0] : memref<16x2xf32, #tpu.memory_space<vmem>>, vector<16x2xf32>
    %c0_1 = arith.constant 0 : index
    %c0_2 = arith.constant 0 : index
    %1 = vector.load %arg3[%c0_1, %c0_2] : memref<264x1xf32, #tpu.memory_space<vmem>>, vector<264x1xf32>
    %c0_3 = arith.constant 0 : index
    %c0_4 = arith.constant 0 : index
    %2 = vector.load %arg2[%c0_3, %c0_4] : memref<200x128xf32, #tpu.memory_space<vmem>>, vector<96x16xf32>
    %cst = arith.constant dense<0.000000e+00> : vector<96x2xf32>
    %3 = tpu.matmul %2, %0, %cst {dimension_numbers = #tpu.dot_dimension_numbers<[1], [0], [0], [1], [0, 0, 1, 1], [], []>} : vector<96x16xf32>, vector<16x2xf32>, vector<96x2xf32> -> vector<96x2xf32>
    %4 = vector.extract_strided_slice %3 {offsets = [0, 0], sizes = [64, 2], strides = [1, 1]} : vector<96x2xf32> to vector<64x2xf32>
    %5 = vector.extract_strided_slice %1 {offsets = [0, 0], sizes = [64, 1], strides = [1, 1]} : vector<264x1xf32> to vector<64x1xf32>
    %6 = vector.broadcast %5 : vector<64x1xf32> to vector<64x2xf32>
    %7 = arith.addf %4, %6 : vector<64x2xf32>
    %cst_5 = arith.constant 5.000000e-01 : f32
    %8 = vector.broadcast %cst_5 : f32 to vector<64x2xf32>
    %9 = arith.mulf %8, %7 : vector<64x2xf32>
    %10 = math.tanh %9 : vector<64x2xf32>
    %cst_6 = arith.constant 1.000000e+00 : f32
    %11 = vector.broadcast %cst_6 : f32 to vector<64x2xf32>
    %12 = arith.addf %11, %10 : vector<64x2xf32>
    %cst_7 = arith.constant 5.000000e-01 : f32
    %13 = vector.broadcast %cst_7 : f32 to vector<64x2xf32>
    %14 = arith.mulf %13, %12 : vector<64x2xf32>
    %15 = vector.extract_strided_slice %14 {offsets = [0, 0], sizes = [32, 2], strides = [1, 1]} : vector<64x2xf32> to vector<32x2xf32>
    %16 = vector.extract_strided_slice %14 {offsets = [32, 0], sizes = [32, 2], strides = [1, 1]} : vector<64x2xf32> to vector<32x2xf32>
    %17 = vector.extract_strided_slice %3 {offsets = [64, 0], sizes = [32, 2], strides = [1, 1]} : vector<96x2xf32> to vector<32x2xf32>
    %18 = vector.extract_strided_slice %1 {offsets = [64, 0], sizes = [32, 1], strides = [1, 1]} : vector<264x1xf32> to vector<32x1xf32>
    %19 = vector.broadcast %18 : vector<32x1xf32> to vector<32x2xf32>
    %20 = arith.addf %17, %19 : vector<32x2xf32>
    %21 = vector.extract_strided_slice %1 {offsets = [96, 0], sizes = [32, 1], strides = [1, 1]} : vector<264x1xf32> to vector<32x1xf32>
    %22 = vector.broadcast %21 : vector<32x1xf32> to vector<32x2xf32>
    %23 = arith.mulf %15, %22 : vector<32x2xf32>
    %24 = arith.addf %20, %23 : vector<32x2xf32>
    %25 = math.tanh %24 : vector<32x2xf32>
    %cst_8 = arith.constant 1.000000e+00 : f32
    %26 = vector.broadcast %cst_8 : f32 to vector<32x2xf32>
    %27 = arith.subf %26, %16 : vector<32x2xf32>
    %28 = arith.mulf %27, %25 : vector<32x2xf32>
    %c96 = arith.constant 96 : index
    %c0_9 = arith.constant 0 : index
    %29 = vector.load %arg2[%c96, %c0_9] : memref<200x128xf32, #tpu.memory_space<vmem>>, vector<96x32xf32>
    %cst_10 = arith.constant dense<0.000000e+00> : vector<96x2xf32>
    %30 = tpu.matmul %29, %28, %cst_10 {dimension_numbers = #tpu.dot_dimension_numbers<[1], [0], [0], [1], [0, 0, 1, 1], [], []>} : vector<96x32xf32>, vector<32x2xf32>, vector<96x2xf32> -> vector<96x2xf32>
    %31 = vector.extract_strided_slice %30 {offsets = [0, 0], sizes = [64, 2], strides = [1, 1]} : vector<96x2xf32> to vector<64x2xf32>
    %32 = vector.extract_strided_slice %1 {offsets = [128, 0], sizes = [64, 1], strides = [1, 1]} : vector<264x1xf32> to vector<64x1xf32>
    %33 = vector.broadcast %32 : vector<64x1xf32> to vector<64x2xf32>
    %34 = arith.addf %31, %33 : vector<64x2xf32>
    %cst_11 = arith.constant 5.000000e-01 : f32
    %35 = vector.broadcast %cst_11 : f32 to vector<64x2xf32>
    %36 = arith.mulf %35, %34 : vector<64x2xf32>
    %37 = math.tanh %36 : vector<64x2xf32>
    %cst_12 = arith.constant 1.000000e+00 : f32
    %38 = vector.broadcast %cst_12 : f32 to vector<64x2xf32>
    %39 = arith.addf %38, %37 : vector<64x2xf32>
    %cst_13 = arith.constant 5.000000e-01 : f32
    %40 = vector.broadcast %cst_13 : f32 to vector<64x2xf32>
    %41 = arith.mulf %40, %39 : vector<64x2xf32>
    %42 = vector.extract_strided_slice %41 {offsets = [0, 0], sizes = [32, 2], strides = [1, 1]} : vector<64x2xf32> to vector<32x2xf32>
    %43 = vector.extract_strided_slice %41 {offsets = [32, 0], sizes = [32, 2], strides = [1, 1]} : vector<64x2xf32> to vector<32x2xf32>
    %44 = vector.extract_strided_slice %30 {offsets = [64, 0], sizes = [32, 2], strides = [1, 1]} : vector<96x2xf32> to vector<32x2xf32>
    %45 = vector.extract_strided_slice %1 {offsets = [192, 0], sizes = [32, 1], strides = [1, 1]} : vector<264x1xf32> to vector<32x1xf32>
    %46 = vector.broadcast %45 : vector<32x1xf32> to vector<32x2xf32>
    %47 = arith.addf %44, %46 : vector<32x2xf32>
    %48 = vector.extract_strided_slice %1 {offsets = [224, 0], sizes = [32, 1], strides = [1, 1]} : vector<264x1xf32> to vector<32x1xf32>
    %49 = vector.broadcast %48 : vector<32x1xf32> to vector<32x2xf32>
    %50 = arith.mulf %42, %49 : vector<32x2xf32>
    %51 = arith.addf %47, %50 : vector<32x2xf32>
    %52 = math.tanh %51 : vector<32x2xf32>
    %cst_14 = arith.constant 1.000000e+00 : f32
    %53 = vector.broadcast %cst_14 : f32 to vector<32x2xf32>
    %54 = arith.subf %53, %43 : vector<32x2xf32>
    %55 = arith.mulf %54, %52 : vector<32x2xf32>
    %c192 = arith.constant 192 : index
    %c0_15 = arith.constant 0 : index
    %56 = vector.load %arg2[%c192, %c0_15] : memref<200x128xf32, #tpu.memory_space<vmem>>, vector<1x32xf32>
    %cst_16 = arith.constant dense<0.000000e+00> : vector<1x2xf32>
    %57 = tpu.matmul %56, %55, %cst_16 {dimension_numbers = #tpu.dot_dimension_numbers<[1], [0], [0], [1], [0, 0, 1, 1], [], []>} : vector<1x32xf32>, vector<32x2xf32>, vector<1x2xf32> -> vector<1x2xf32>
    %58 = vector.extract_strided_slice %1 {offsets = [256, 0], sizes = [1, 1], strides = [1, 1]} : vector<264x1xf32> to vector<1x1xf32>
    %59 = vector.broadcast %58 : vector<1x1xf32> to vector<1x2xf32>
    %60 = arith.addf %57, %59 : vector<1x2xf32>
    %c0_17 = arith.constant 0 : index
    %c0_18 = arith.constant 0 : index
    %61 = vector.load %arg4[%c0_17, %c0_18] : memref<1x2xf32, #tpu.memory_space<vmem>>, vector<1x2xf32>
    tpu.vector_store %arg4[%c0_17, %c0_18], %60 {strides = array<i32>} : memref<1x2xf32, #tpu.memory_space<vmem>>, vector<1x2xf32>,
    return
  }
  func.func @transform_0(%arg0: i32) -> (i32, i32) {
    %c0_i32 = arith.constant 0 : i32
    %c0_i32_0 = arith.constant 0 : i32
    return %c0_i32, %arg0 : i32, i32
  }
  func.func @transform_1(%arg0: i32) -> (i32, i32) {
    %c0_i32 = arith.constant 0 : i32
    %c0_i32_0 = arith.constant 0 : i32
    %c0_i32_1 = arith.constant 0 : i32
    return %c0_i32, %c0_i32_0 : i32, i32
  }
  func.func @transform_2(%arg0: i32) -> (i32, i32) {
    %c0_i32 = arith.constant 0 : i32
    %c0_i32_0 = arith.constant 0 : i32
    %c0_i32_1 = arith.constant 0 : i32
    return %c0_i32, %c0_i32_0 : i32, i32
  }
  func.func @transform_3(%arg0: i32) -> (i32, i32) {
    %c0_i32 = arith.constant 0 : i32
    %c0_i32_0 = arith.constant 0 : i32
    return %c0_i32, %arg0 : i32, i32
  }
}

</mosaic_0001>

<bundles_post_ra>
// kernel: tpu_custom_call.1
= control target key start
LH: loop header
LB: loop body
LE: loop exit
PB: predicated region body
PF: predicated region fallthrough
CT: control target
= control target key end

     0   :  { %vm62_vm0 = vcmask 130048   ;;  %v997_v4 = vmov 0   ;;  %s1241_s0 = inlined_call_operand.vmem [shape: f32[16,2], index: 0, kind: input, shape index: {}]   ;;  %s1242_s1 = inlined_call_operand.vmem [shape: f32[200,128], index: 1, kind: input, shape index: {}]   ;;  %s1243_s2 = inlined_call_operand.vmem [shape: f32[264,1], index: 2, kind: input, shape index: {}]   ;;  %s1244_s3 = inlined_call_operand.hbm [shape: f32[1,2], index: 3, kind: output, shape index: {}]  }
   0x1   :  { %v15_v0 = vld [vmem:[%s1241_s0] sm:$0xff]  ;;  %v16_v1 = vld [vmem:[%s1241_s0 + $0x8] sm:$0xff]  ;;  %923 = vset.pattern.permute.xlu0 %v997_v4  ;;  %924 = vset.pattern.permute.xlu1 %v997_v4  ;;  %v19_v7 = vld [vmem:[%s1243_s2 + $0x10] sm:$0xff] }
   0x2   :  { %v50_v2 = vld [vmem:[%s1242_s1] sm:$0xff]  ;;  %v900_v3 = vpack.c.bf16 %v16_v1, %v15_v0  ;;  %v51_v6 = vld [vmem:[%s1242_s1 + $0x8] sm:$0xff]  ;;  %v52_v8 = vld [vmem:[%s1242_s1 + $0x10] sm:$0xff]  ;;  %236 = vperm.xlu1 %924, %v19_v7  }
   0x3   :  { %845 = vmatprep.mubr.msk.f32.mxu0 %vm62_vm0, %v50_v2  ;;  %v17_v5 = vld [vmem:[%s1243_s2] sm:$0xff]  ;;  %v18_v9 = vld [vmem:[%s1243_s2 + $0x8] sm:$0xff]  ;;  %v20_v10 = vld [vmem:[%s1243_s2 + $0x18] sm:$0xff] }
   0x4   :  { %901 = vmatprep.subr.bf16.mxu0 %v900_v3  ;;  %226 = vperm.xlu0 %923, %v17_v5   ;;  %v53_v11 = vld [vmem:[%s1242_s1 + $0x18] sm:$0xff]  ;;  %v54_v12 = vld [vmem:[%s1242_s1 + $0x20] sm:$0xff]  ;;  %v22_v14 = vld [vmem:[%s1243_s2 + $0x28] sm:$0xff] }
   0x5   :  { %903 = vmatpush3.bf16.msra.mxu0 %v900_v3  ;;  %v21_v13 = vld [vmem:[%s1243_s2 + $0x20] sm:$0xff]  ;;  %v55_v15 = vld [vmem:[%s1242_s1 + $0x28] sm:$0xff]  ;;  %v56_v16 = vld [vmem:[%s1242_s1 + $0x30] sm:$0xff] }
   0x6   :  { %241 = vperm.xlu1 %924, %v20_v10   ;;  %v23_v17 = vld [vmem:[%s1243_s2 + $0x30] sm:$0xff]  ;;  %v24_v18 = vld [vmem:[%s1243_s2 + $0x38] sm:$0xff] }
   0x8   :  { %846 = vmatmul.mubr.msk.f32.vlgmr.msra.gmra.mrb[0].mxu0 %vm62_vm0, %v51_v6  ;;  %231 = vperm.xlu0 %923, %v18_v9  }
   0x9   :  { %848 = vmatprep.mubr.msk.f32.mxu0 %vm62_vm0, %v52_v8 }
   0xa   :  { %251 = vperm.xlu1 %924, %v22_v14  }
   0xc   :  { %849 = vmatmul.mubr.msk.f32.gmra.mrb[2].mxu0 %vm62_vm0, %v53_v11  ;;  %246 = vperm.xlu0 %923, %v21_v13  }
   0xd   :  { %851 = vmatprep.mubr.msk.f32.mxu0 %vm62_vm0, %v54_v12 }
  0x10   :  { %852 = vmatmul.mubr.msk.f32.gmra.mrb[4].mxu0 %vm62_vm0, %v55_v15 }
  0x11   :  { %8 = vsyncpa [#allocation3], 0  ;;  %854 = vmatprep.mubr.msk.f32.mxu0 %vm62_vm0, %v56_v16  ;;  %v57_v19 = vld [vmem:[%s1242_s1 + $0x38] sm:$0xff]  ;;  %256 = vperm.xlu0 %923, %v23_v17   ;;  %v58_v20 = vld [vmem:[%s1242_s1 + $0x40] sm:$0xff]  ;;  %vm380_vm1 = vcmask 261120   ;;  %vm999_vm2 = vmmov 0  }
  0x12   :  { %261 = vperm.xlu1 %924, %v24_v18   ;;  %v25_v21 = vld [vmem:[%s1243_s2 + $0x40] sm:$0xff]  ;;  %v26_v22 = vld [vmem:[%s1243_s2 + $0x48] sm:$0xff]  ;;  %v60_v24 = vld [vmem:[%s1242_s1 + $0x50] sm:$0xff]  ;;  %s1001_s19 = smov [#allocation2]   ;;  %vm765_vm3 = vcmask 8192  }
  0x13   :  { %v59_v23 = vld [vmem:[%s1242_s1 + $0x48] sm:$0xff]  ;;  %v29_v25 = vld [vmem:[%s1243_s2 + $0x60] sm:$0xff]  ;;  %v61_v27 = vld [vmem:[%s1242_s1 + $0x58] sm:$0xff]  ;;  %s773_s20 = sshll.u32 %s1001_s19, 4  ;;  %s774_s20 = int_to_ptr.vmem [resolvable:$true] %s773_s20 }
  0x14   :  { %855 = vmatmul.mubr.msk.f32.gmra.mrb[6].mxu0 %vm62_vm0, %v57_v19  ;;  %v30_v26 = vld [vmem:[%s1243_s2 + $0x68] sm:$0xff]  ;;  %v27_v28 = vld [vmem:[%s1243_s2 + $0x50] sm:$0xff]  ;;  %v28_v29 = vld [vmem:[%s1243_s2 + $0x58] sm:$0xff]  ;;  %s973_s21 = scalar_lea.vmem %s774_s20, 16  ;;  %s977_s0 = scalar_lea.vmem %s774_s20, 32 }
  0x15   :  { %857 = vmatprep.mubr.msk.f32.mxu0 %vm62_vm0, %v58_v20  ;;  %306 = vperm.xlu0 %923, %v25_v21   ;;  %v31_v30 = vld [vmem:[%s1243_s2 + $0x70] sm:$0xff]  ;;  %v32_v31 = vld [vmem:[%s1243_s2 + $0x78] sm:$0xff]  ;;  %v33_v32 = vld [vmem:[%s1243_s2 + $0x80] sm:$0xff]  ;;  %p974_p0 = scmp.ne.s32.totalorder %s774_s20, %s973_s21  ;;  %p978_p1 = scmp.lt.s32.totalorder %s774_s20, %s774_s20 }
  0x16   :  { %311 = vperm.xlu1 %924, %v26_v22   ;;  %v34_v33 = vld [vmem:[%s1243_s2 + $0x88] sm:$0xff]  ;;  %v35_v34 = vld [vmem:[%s1243_s2 + $0x90] sm:$0xff]  ;;  %v36_v35 = vld [vmem:[%s1243_s2 + $0x98] sm:$0xff]  ;;  %p979_p2 = scmp.lt.s32.totalorder %s977_s0, %s973_s21 }
  0x17   :  { %v37_v36 = vld [vmem:[%s1243_s2 + $0xa0] sm:$0xff]  ;;  %v38_v37 = vld [vmem:[%s1243_s2 + $0xa8] sm:$0xff]  ;;  %v39_v38 = vld [vmem:[%s1243_s2 + $0xb0] sm:$0xff] }
  0x18   :  { %858 = vmatmul.mubr.msk.f32.gmra.mrb[8].mxu0 %vm62_vm0, %v59_v23  ;;  %v40_v39 = vld [vmem:[%s1243_s2 + $0xb8] sm:$0xff]  ;;  %v41_v40 = vld [vmem:[%s1243_s2 + $0xc0] sm:$0xff]  ;;  %v42_v41 = vld [vmem:[%s1243_s2 + $0xc8] sm:$0xff]  ;;  %p980_p3 = por %p979_p2, %p978_p1 }
  0x19   :  { %860 = vmatprep.mubr.msk.f32.mxu0 %vm62_vm0, %v60_v24  ;;  %330 = vperm.xlu0 %923, %v29_v25   ;;  %v45_v42 = vld [vmem:[%s1243_s2 + $0xe0] sm:$0xff]  ;;  %v46_v43 = vld [vmem:[%s1243_s2 + $0xe8] sm:$0xff]  ;;  %v43_v44 = vld [vmem:[%s1243_s2 + $0xd0] sm:$0xff] }
  0x1a   :  { %335 = vperm.xlu1 %924, %v30_v26   ;;  %v44_v45 = vld [vmem:[%s1243_s2 + $0xd8] sm:$0xff]  ;;  %v47_v46 = vld [vmem:[%s1243_s2 + $0xf0] sm:$0xff]  ;;  %v49_v48 = vld [vmem:[%s1243_s2 + $0x100] sm:$0xff]  ;;  %p981_p4 = pnand %p980_p3, %p974_p0 }
  0x1b   :  { %v48_v47 = vld [vmem:[%s1243_s2 + $0xf8] sm:$0xff]  ;;  %v368_v49 = vld [vmem:[%s1242_s1 + $0x60] sm:$0xff] }
  0x1c   :  { %861 = vmatmul.mubr.msk.f32.gmra.mrb[10].mxu0 %vm62_vm0, %v61_v27  ;;  %871 = vmatprep.mubr.msk.f32.mxu1 %vm380_vm1, %v368_v49 }
  0x1d   :  { %316 = vperm.xlu0 %923, %v27_v28  }
  0x1e   :  { %321 = vperm.xlu1 %924, %v28_v29  }
  0x21   :  { %340 = vperm.xlu0 %923, %v31_v30  }
  0x22   :  { %345 = vperm.xlu1 %924, %v32_v31  }
  0x25   :  { %544 = vperm.xlu0 %923, %v33_v32  }
  0x26   :  { %549 = vperm.xlu1 %924, %v34_v33  }
  0x29   :  { %554 = vperm.xlu0 %923, %v35_v34  }
  0x2a   :  { %559 = vperm.xlu1 %924, %v36_v35  }
  0x2d   :  { %564 = vperm.xlu0 %923, %v37_v36  }
  0x2e   :  { %569 = vperm.xlu1 %924, %v38_v37  }
  0x31   :  { %574 = vperm.xlu0 %923, %v39_v38  }
  0x32   :  { %579 = vperm.xlu1 %924, %v40_v39  }
  0x35   :  { %624 = vperm.xlu0 %923, %v41_v40  }
  0x36   :  { %629 = vperm.xlu1 %924, %v42_v41  }
  0x39   :  { %648 = vperm.xlu0 %923, %v45_v42  }
  0x3a   :  { %653 = vperm.xlu1 %924, %v46_v43  }
  0x3d   :  { %634 = vperm.xlu0 %923, %v43_v44  }
  0x3e   :  { %639 = vperm.xlu1 %924, %v44_v45  }
  0x41   :  { %658 = vperm.xlu0 %923, %v47_v46  }
  0x42   :  { %663 = vperm.xlu1 %924, %v48_v47  }
  0x45   :  { %689 = vperm.xlu0 %923, %v49_v48  }
  0x81   :  { %v237_v50 = vpop.permute.xlu1 %236 }
  0x83   :  { %v227_v51 = vpop.permute.xlu0 %226 }
  0x85   :  { %v242_v52 = vpop.permute.xlu1 %241 }
  0x87   :  { %v232_v53 = vpop.permute.xlu0 %231 }
  0x89   :  { %v252_v54 = vpop.permute.xlu1 %251 }
  0x8b   :  { %v247_v55 = vpop.permute.xlu0 %246 }
  0x90   :  { %v257_v57 = vpop.permute.xlu0 %256 }
  0x91   :  { %v262_v56 = vpop.permute.xlu1 %261 }
  0x94   :  { %v307_v4 = vpop.permute.xlu0 %306 }
  0x95   :  { %v312_v1 = vpop.permute.xlu1 %311 }
  0x98   :  { %v331_v14 = vpop.permute.xlu0 %330 }
  0x99   :  { %v336_v12 = vpop.permute.xlu1 %335 }
  0x9c   :  { %v317_v29 = vpop.permute.xlu0 %316 }
  0x9d   :  { %v322_v26 = vpop.permute.xlu1 %321 }
  0xa0   :  { %v341_v49 = vpop.permute.xlu0 %340 }
  0xa1   :  { %v346_v45 = vpop.permute.xlu1 %345 }
  0xdb   :  { %v847_v58 = vpop.f32.mrb[0].mxu0 }
  0xdc   :  { %v265_v59 = vadd.f32 %v847_v58, %v232_v53  ;;  %v165_v60 = vpop.f32.mrb[1].mxu0 }
  0xdd   :  { %v264_v61 = vadd.f32 %v227_v51, %v165_v60 }
  0xde   :  { %v273_v62 = vmul.f32 0.5, %v265_v59 }
  0xdf   :  { %v272_v63 = vmul.f32 0.5, %v264_v61  ;;  %v850_v0 = vpop.f32.mrb[2].mxu0 }
  0xe0   :  { %925 = vtanh.f32 %v273_v62  ;;  %v267_v2 = vadd.f32 %v850_v0, %v242_v52  ;;  %v175_v3 = vpop.f32.mrb[3].mxu0 }
  0xe1   :  { %927 = vtanh.f32 %v272_v63  ;;  %v266_v5 = vadd.f32 %v237_v50, %v175_v3 }
  0xe2   :  { %v275_v6 = vmul.f32 0.5, %v267_v2 }
  0xe3   :  { %v274_v7 = vmul.f32 0.5, %v266_v5  ;;  %v853_v8 = vpop.f32.mrb[4].mxu0 }
  0xe4   :  { %929 = vtanh.f32 %v275_v6  ;;  %v269_v9 = vadd.f32 %v853_v8, %v252_v54  ;;  %v185_v10 = vpop.f32.mrb[5].mxu0 }
  0xe5   :  { %931 = vtanh.f32 %v274_v7  ;;  %v268_v11 = vadd.f32 %v247_v55, %v185_v10 }
  0xe6   :  { %v277_v13 = vmul.f32 0.5, %v269_v9 }
  0xe7   :  { %v276_v15 = vmul.f32 0.5, %v268_v11  ;;  %v856_v16 = vpop.f32.mrb[6].mxu0 }
  0xe8   :  { %933 = vtanh.f32 %v277_v13  ;;  %v271_v17 = vadd.f32 %v856_v16, %v262_v56  ;;  %v195_v18 = vpop.f32.mrb[7].mxu0  ;;  %v369_v16 = vld [vmem:[%s1242_s1 + $0x68] sm:$0xff] }
  0xe9   :  { %935 = vtanh.f32 %v276_v15  ;;  %v270_v19 = vadd.f32 %v257_v57, %v195_v18  ;;  %v371_v18 = vld [vmem:[%s1242_s1 + $0x78] sm:$0xff] }
  0xea   :  { %v926_v20 = vpop.eup %925  ;;  %v279_v21 = vmul.f32 0.5, %v271_v17  ;;  %v370_v17 = vld [vmem:[%s1242_s1 + $0x70] sm:$0xff] }
  0xeb   :  { %v928_v22 = vpop.eup %927  ;;  %v289_v23 = vadd.f32 1.0, %v926_v20  ;;  %v278_v24 = vmul.f32 0.5, %v270_v19  ;;  %v859_v25 = vpop.f32.mrb[8].mxu0  ;;  %v372_v19 = vld [vmem:[%s1242_s1 + $0x80] sm:$0xff]  ;;  %v373_v20 = vld [vmem:[%s1242_s1 + $0x88] sm:$0xff] }
  0xec   :  { %v288_v27 = vadd.f32 1.0, %v928_v22  ;;  %937 = vtanh.f32 %v279_v21  ;;  %v205_v28 = vpop.f32.mrb[9].mxu0  ;;  %v325_v35 = vadd.f32 %v859_v25, %v312_v1  ;;  %v374_v21 = vld [vmem:[%s1242_s1 + $0x90] sm:$0xff]  ;;  %v375_v22 = vld [vmem:[%s1242_s1 + $0x98] sm:$0xff] }
  0xed   :  { %v297_v30 = vmul.f32 0.5, %v289_v23  ;;  %939 = vtanh.f32 %v278_v24  ;;  %v324_v39 = vadd.f32 %v307_v4, %v205_v28  ;;  %v376_v23 = vld [vmem:[%s1242_s1 + $0xa0] sm:$0xff]  ;;  %v377_v24 = vld [vmem:[%s1242_s1 + $0xa8] sm:$0xff]  ;;  %v378_v25 = vld [vmem:[%s1242_s1 + $0xb0] sm:$0xff]  ;;  %v1000_v28 = vmov 0.0  }
  0xee   :  { %v930_v31 = vpop.eup %929  ;;  %v296_v32 = vmul.f32 0.5, %v288_v27  ;;  %v998_v27 = vmov 0.0|0.0   ;;  %897 = vmatprep.mubr.msk.f32.mxu0 %vm999_vm2, %v1000_v28 }
  0xef   :  { %v932_v33 = vpop.eup %931  ;;  %v291_v34 = vadd.f32 1.0, %v930_v31  ;;  %v349_v36 = vmul.f32 %v336_v12, %v297_v30  ;;  %v862_v37 = vpop.f32.mrb[10].mxu0  ;;  %912 = vmatprep.subr.bf16.mxu0 %v998_v27 }
  0xf0   :  { %v290_v38 = vadd.f32 1.0, %v932_v33  ;;  %v348_v40 = vmul.f32 %v331_v14, %v296_v32  ;;  %v215_v41 = vpop.f32.mrb[11].mxu0  ;;  %v327_v50 = vadd.f32 %v862_v37, %v322_v26  ;;  %v379_v26 = vld [vmem:[%s1242_s1 + $0xb8] sm:$0xff]  ;;  %v545_v30 = vpop.permute.xlu0 %544 }
  0xf1   :  { %v299_v42 = vmul.f32 0.5, %v291_v34  ;;  %v353_v43 = vadd.f32 %v349_v36, %v325_v35  ;;  %v326_v53 = vadd.f32 %v317_v29, %v215_v41  ;;  %v550_v29 = vpop.permute.xlu1 %549 }
  0xf2   :  { %v934_v44 = vpop.eup %933  ;;  %v298_v46 = vmul.f32 0.5, %v290_v38  ;;  %v352_v47 = vadd.f32 %v348_v40, %v324_v39 }
  0xf3   :  { %v936_v48 = vpop.eup %935  ;;  %941 = vtanh.f32 %v353_v43  ;;  %v351_v51 = vmul.f32 %v346_v45, %v299_v42  ;;  %v293_v52 = vadd.f32 1.0, %v934_v44 }
  0xf4   :  { %943 = vtanh.f32 %v352_v47  ;;  %v350_v54 = vmul.f32 %v341_v49, %v298_v46  ;;  %v292_v55 = vadd.f32 1.0, %v936_v48  ;;  %v555_v32 = vpop.permute.xlu0 %554 }
  0xf5   :  { %v355_v56 = vadd.f32 %v351_v51, %v327_v50  ;;  %v301_v60 = vmul.f32 0.5, %v293_v52  ;;  %v560_v31 = vpop.permute.xlu1 %559 }
  0xf6   :  { %v938_v57 = vpop.eup %937  ;;  %v354_v58 = vadd.f32 %v350_v54, %v326_v53  ;;  %v300_v62 = vmul.f32 0.5, %v292_v55 }
  0xf7   :  { %v940_v59 = vpop.eup %939  ;;  %945 = vtanh.f32 %v355_v56  ;;  %v295_v61 = vadd.f32 1.0, %v938_v57  ;;  %v361_v0 = vsub.f32 1.0, %v301_v60 }
  0xf8   :  { %947 = vtanh.f32 %v354_v58  ;;  %v294_v63 = vadd.f32 1.0, %v940_v59  ;;  %v360_v3 = vsub.f32 1.0, %v300_v62  ;;  %v565_v34 = vpop.permute.xlu0 %564 }
  0xf9   :  { %v303_v1 = vmul.f32 0.5, %v295_v61  ;;  %v570_v33 = vpop.permute.xlu1 %569 }
  0xfa   :  { %v302_v4 = vmul.f32 0.5, %v294_v63 }
  0xfb   :  { %v363_v8 = vsub.f32 1.0, %v303_v1 }
  0xfc   :  { %v362_v10 = vsub.f32 1.0, %v302_v4  ;;  %v575_v36 = vpop.permute.xlu0 %574 }
  0xfd   :  { %v942_v2 = vpop.eup %941  ;;  %v580_v35 = vpop.permute.xlu1 %579 }
  0xfe   :  { %v944_v5 = vpop.eup %943  ;;  %v365_v6 = vmul.f32 %v942_v2, %v361_v0 }
  0xff   :  { %v364_v7 = vmul.f32 %v944_v5, %v360_v3 }
 0x100   :  { %v625_v47 = vpop.permute.xlu0 %624 }
 0x101   :  { %v946_v9 = vpop.eup %945  ;;  %v904_v11 = vpack.c.bf16 %v365_v6, %v364_v7  ;;  %v630_v44 = vpop.permute.xlu1 %629 }
 0x102   :  { %v948_v12 = vpop.eup %947  ;;  %v367_v13 = vmul.f32 %v946_v9, %v363_v8 }
 0x103   :  { %905 = vmatprep.subr.bf16.mxu1 %v904_v11  ;;  %v366_v14 = vmul.f32 %v948_v12, %v362_v10 }
 0x104   :  { %907 = vmatpush3.bf16.msra.mxu1 %v904_v11  ;;  %v649_v57 = vpop.permute.xlu0 %648 }
 0x105   :  { %v908_v15 = vpack.c.bf16 %v367_v13, %v366_v14  ;;  %v654_v55 = vpop.permute.xlu1 %653 }
 0x107   :  { %909 = vmatprep.subr.bf16.mxu1 %v908_v15 }
 0x108   :  { %911 = vmatpush3.bf16.msra.mxu1 %v908_v15  ;;  %v635_v8 = vpop.permute.xlu0 %634 }
 0x109   :  { %v640_v5 = vpop.permute.xlu1 %639 }
 0x10b   :  { %872 = vmatmul.mubr.msk.f32.vlgmr.msra.gmra.mrb[0].mxu1 %vm380_vm1, %v369_v16 }
 0x10c   :  { %874 = vmatprep.mubr.msk.f32.mxu1 %vm380_vm1, %v370_v17 }
 0x10f   :  { %875 = vmatmul.mubr.msk.f32.gmra.mrb[2].mxu1 %vm380_vm1, %v371_v18 }
 0x110   :  { %877 = vmatprep.mubr.msk.f32.mxu1 %vm380_vm1, %v372_v19 }
 0x113   :  { %878 = vmatmul.mubr.msk.f32.gmra.mrb[4].mxu1 %vm380_vm1, %v373_v20 }
 0x114   :  { %880 = vmatprep.mubr.msk.f32.mxu1 %vm380_vm1, %v374_v21 }
 0x117   :  { %881 = vmatmul.mubr.msk.f32.gmra.mrb[6].mxu1 %vm380_vm1, %v375_v22 }
 0x118   :  { %883 = vmatprep.mubr.msk.f32.mxu1 %vm380_vm1, %v376_v23 }
 0x11b   :  { %884 = vmatmul.mubr.msk.f32.gmra.mrb[8].mxu1 %vm380_vm1, %v377_v24  ;;  %v664_v24 = vpop.permute.xlu1 %663 }
 0x11c   :  { %886 = vmatprep.mubr.msk.f32.mxu1 %vm380_vm1, %v378_v25 }
 0x11f   :  { %887 = vmatmul.mubr.msk.f32.gmra.mrb[10].mxu1 %vm380_vm1, %v379_v26 }
 0x1de   :  { %v873_v37 = vpop.f32.mrb[0].mxu1 }
 0x1df   :  { %v583_v38 = vadd.f32 %v873_v37, %v550_v29  ;;  %v483_v39 = vpop.f32.mrb[1].mxu1  ;;  %v659_v29 = vpop.permute.xlu0 %658 }
 0x1e0   :  { %v582_v40 = vadd.f32 %v545_v30, %v483_v39 }
 0x1e1   :  { %v591_v41 = vmul.f32 0.5, %v583_v38 }
 0x1e2   :  { %v590_v42 = vmul.f32 0.5, %v582_v40  ;;  %v876_v43 = vpop.f32.mrb[2].mxu1 }
 0x1e3   :  { %949 = vtanh.f32 %v591_v41  ;;  %v585_v45 = vadd.f32 %v876_v43, %v560_v31  ;;  %v493_v46 = vpop.f32.mrb[3].mxu1 }
 0x1e4   :  { %951 = vtanh.f32 %v590_v42  ;;  %v584_v48 = vadd.f32 %v555_v32, %v493_v46 }
 0x1e5   :  { %v593_v49 = vmul.f32 0.5, %v585_v45 }
 0x1e6   :  { %v592_v50 = vmul.f32 0.5, %v584_v48  ;;  %v879_v51 = vpop.f32.mrb[4].mxu1 }
 0x1e7   :  { %953 = vtanh.f32 %v593_v49  ;;  %v587_v52 = vadd.f32 %v879_v51, %v570_v33  ;;  %v503_v53 = vpop.f32.mrb[5].mxu1 }
 0x1e8   :  { %955 = vtanh.f32 %v592_v50  ;;  %v586_v54 = vadd.f32 %v565_v34, %v503_v53 }
 0x1e9   :  { %v595_v56 = vmul.f32 0.5, %v587_v52 }
 0x1ea   :  { %v594_v58 = vmul.f32 0.5, %v586_v54  ;;  %v882_v59 = vpop.f32.mrb[6].mxu1 }
 0x1eb   :  { %957 = vtanh.f32 %v595_v56  ;;  %v589_v60 = vadd.f32 %v882_v59, %v580_v35  ;;  %v513_v61 = vpop.f32.mrb[7].mxu1 }
 0x1ec   :  { %959 = vtanh.f32 %v594_v58  ;;  %v588_v62 = vadd.f32 %v575_v36, %v513_v61  ;;  %v690_v61 = vpop.permute.xlu0 %689 }
 0x1ed   :  { %v950_v63 = vpop.eup %949  ;;  %v597_v0 = vmul.f32 0.5, %v589_v60  ;;  %v686_v60 = vld [vmem:[%s1242_s1 + $0xc0] sm:$0x1] }
 0x1ee   :  { %v952_v1 = vpop.eup %951  ;;  %v607_v2 = vadd.f32 1.0, %v950_v63  ;;  %v596_v3 = vmul.f32 0.5, %v588_v62  ;;  %v885_v4 = vpop.f32.mrb[8].mxu1 }
 0x1ef   :  { %v606_v6 = vadd.f32 1.0, %v952_v1  ;;  %961 = vtanh.f32 %v597_v0  ;;  %v523_v7 = vpop.f32.mrb[9].mxu1  ;;  %v643_v14 = vadd.f32 %v885_v4, %v630_v44 }
 0x1f0   :  { %v615_v9 = vmul.f32 0.5, %v607_v2  ;;  %963 = vtanh.f32 %v596_v3  ;;  %v642_v18 = vadd.f32 %v625_v47, %v523_v7 }
 0x1f1   :  { %v954_v10 = vpop.eup %953  ;;  %v614_v11 = vmul.f32 0.5, %v606_v6 }
 0x1f2   :  { %v956_v12 = vpop.eup %955  ;;  %v609_v13 = vadd.f32 1.0, %v954_v10  ;;  %v667_v15 = vmul.f32 %v654_v55, %v615_v9  ;;  %v888_v16 = vpop.f32.mrb[10].mxu1 }
 0x1f3   :  { %v608_v17 = vadd.f32 1.0, %v956_v12  ;;  %v666_v19 = vmul.f32 %v649_v57, %v614_v11  ;;  %v533_v20 = vpop.f32.mrb[11].mxu1  ;;  %v645_v30 = vadd.f32 %v888_v16, %v640_v5 }
 0x1f4   :  { %v617_v21 = vmul.f32 0.5, %v609_v13  ;;  %v671_v22 = vadd.f32 %v667_v15, %v643_v14  ;;  %v644_v33 = vadd.f32 %v635_v8, %v533_v20 }
 0x1f5   :  { %v958_v23 = vpop.eup %957  ;;  %v616_v25 = vmul.f32 0.5, %v608_v17  ;;  %v670_v26 = vadd.f32 %v666_v19, %v642_v18 }
 0x1f6   :  { %v960_v28 = vpop.eup %959  ;;  %965 = vtanh.f32 %v671_v22  ;;  %v669_v31 = vmul.f32 %v664_v24, %v617_v21  ;;  %v611_v32 = vadd.f32 1.0, %v958_v23 }
 0x1f7   :  { %967 = vtanh.f32 %v670_v26  ;;  %v668_v34 = vmul.f32 %v659_v29, %v616_v25  ;;  %v610_v35 = vadd.f32 1.0, %v960_v28 }
 0x1f8   :  { %v673_v36 = vadd.f32 %v669_v31, %v645_v30  ;;  %v619_v40 = vmul.f32 0.5, %v611_v32 }
 0x1f9   :  { %v962_v37 = vpop.eup %961  ;;  %v672_v38 = vadd.f32 %v668_v34, %v644_v33  ;;  %v618_v42 = vmul.f32 0.5, %v610_v35 }
 0x1fa   :  { %v964_v39 = vpop.eup %963  ;;  %969 = vtanh.f32 %v673_v36  ;;  %v613_v41 = vadd.f32 1.0, %v962_v37  ;;  %v679_v44 = vsub.f32 1.0, %v619_v40 }
 0x1fb   :  { %971 = vtanh.f32 %v672_v38  ;;  %v612_v43 = vadd.f32 1.0, %v964_v39  ;;  %v678_v47 = vsub.f32 1.0, %v618_v42 }
 0x1fc   :  { %v621_v45 = vmul.f32 0.5, %v613_v41 }
 0x1fd   :  { %v620_v48 = vmul.f32 0.5, %v612_v43 }
 0x1fe   :  { %v681_v52 = vsub.f32 1.0, %v621_v45 }
 0x1ff   :  { %v680_v54 = vsub.f32 1.0, %v620_v48 }
 0x200   :  { %v966_v46 = vpop.eup %965 }
 0x201   :  { %v968_v49 = vpop.eup %967  ;;  %v683_v50 = vmul.f32 %v966_v46, %v679_v44 }
 0x202   :  { %v682_v51 = vmul.f32 %v968_v49, %v678_v47 }
 0x204   :  { %v970_v53 = vpop.eup %969  ;;  %v913_v55 = vpack.c.bf16 %v683_v50, %v682_v51 }
 0x205   :  { %v972_v56 = vpop.eup %971  ;;  %v685_v57 = vmul.f32 %v970_v53, %v681_v52 }
 0x206   :  { %914 = vmatpush3.bf16.msra.mxu0 %v913_v55  ;;  %v684_v58 = vmul.f32 %v972_v56, %v680_v54 }
 0x207   :  { %915 = vmatprep.subr.bf16.mxu0 %v998_v27 }
 0x208   :  { %v916_v59 = vpack.c.bf16 %v685_v57, %v684_v58 }
 0x20a   :  { %917 = vmatpush3.bf16.msra.mxu0 %v916_v59 }
 0x20d   :  { %898 = vmatmul.mubr.msk.f32.vlgmr.msra.gmra.mrb[12].mxu0 %vm380_vm1, %v686_v60 }
 0x2e0   :  { %v761_v62 = vpop.f32.mrb[12].mxu0 }
 0x2e1   :  { %v762_v63 = vadd.f32 %v761_v62, %v690_v61  ;;  %v899_v0 = vpop.f32.mrb[13].mxu0 }
 0x2e3   :  { %766 = vst.msk [vmem:[#allocation2] sm:$0x1] %vm765_vm3, %v762_v63 }
 0x2e4   :  { %984 = shalt.err (!%p981_p4)
}
 0x2e5   :  { %s985_s2 = scalar_lea.hbm %s1244_s3, 16 }
 0x2e6   :  { %p986_p5 = scmp.ne.s32.totalorder %s1244_s3, %s985_s2  ;;  %p989_p6 = scmp.lt.u32.totalorder %s985_s2, %s1244_s3 }
 0x2e8   :  { %p991_p7 = pnand %p989_p6, %p986_p5 }
 0x2ea   :  { %994 = shalt.err (!%p991_p7)
}
 0x2eb   :  { %776 = dma.vmem_to_hbm [thread:$0]  %s774_s20, 16, %s1244_s3, [#allocation3]  }
 0x2ec   :  { %995 = dma.done.wait [#allocation3], 16  }
 0x2ed   :  { %996 = vsyncadd [#allocation3], 4294967280 }
 0x2ee   :  { %780 = vsyncpa [#allocation3], 1 }

</bundles_post_ra>
